<compile_context>
chip_gen: v7x
topology: tpu7x:2x2x1
jax: 0.10.0
libtpu: 0.0.40
codegen_flags: <defaults>
</compile_context>

<pallas_src>
import functools

import jax
import jax.numpy as jnp
import numpy as np
from jax.experimental import pallas as pl
from jax.experimental.pallas import tpu as pltpu

EPS = 1e-5
TARGET_GRID_STEPS = 8          # >= 4 steps per TensorCore on v7x megacore


def _vmem_capacity_bytes():
    try:
        return int(pltpu.get_tpu_info().vmem_capacity_bytes)
    except Exception:
        return 64 * 1024 * 1024    # conservative fallback (v7x per-core VMEM)


def _pick_band_rows(n, h, w, row_bytes, budget_bytes, max_tile_m):
    """Rows of the low-res image per grid step.

    Must divide H (bands never cross an image), keep th*W sublane-aligned,
    fit the VMEM budget, and leave enough grid steps for both v7x cores.
    """
    divs = [d for d in range(h, 0, -1) if h % d == 0 and (d * w) % 8 == 0]
    if not divs:
        raise ValueError(f"no sublane-aligned band size for H={h}, W={w}")
    feasible = [d for d in divs
                if d * w <= max_tile_m and d * w * row_bytes <= budget_bytes]
    if not feasible:
        feasible = [divs[-1]]                      # smallest band: best effort
    stepped = [d for d in feasible if (n * h) // d >= TARGET_GRID_STEPS]
    return stepped[0] if stepped else feasible[0]


# ----------------------------------------------------------------------------
# Fused kernel: conv1+BN1+ReLU -> deconv taps (phase slab)+BN2+ReLU ->
#               conv3 (block-diag per phase)+BN3+ReLU
#
# Phase decomposition of ConvTranspose2d(k=3, s=2, p=1, op=1), with W[ky,kx]
# as (Cin, Cout) matrices and x00/x01/x10/x11 the self/right/down/down-right
# y1 neighbours (zero outside the image):
#   ee = x00 W11
#   eo = x00 W12 + x01 W10
#   oe = x00 W21 + x10 W01
#   oo = x00 W22 + x01 W20 + x10 W02 + x11 W00
# ----------------------------------------------------------------------------
def _decoder_fused_kernel(x_ref, xh_ref, w1_ref, b1_ref, wtap_ref, b2_ref,
                          wblk_ref, b3_ref, o_ref, *, width, bands_per_image):
    tm = x_ref.shape[0]
    c4 = w1_ref.shape[1]

    # conv1 (1x1) + BN1 (scale folded into w1) + ReLU: band + one halo row.
    y = jnp.dot(x_ref[...], w1_ref[...], preferred_element_type=jnp.float32)
    y = jnp.maximum(y + b1_ref[...], 0.0)
    yh = jnp.dot(xh_ref[...], w1_ref[...], preferred_element_type=jnp.float32)
    yh = jnp.maximum(yh + b1_ref[...], 0.0)
    # For the last band of each image the halo row lies below the image, i.e.
    # it is the deconv's implicit zero padding.
    band = pl.program_id(0) % bands_per_image
    yh = yh * jnp.where(band == bands_per_image - 1, 0.0, 1.0)

    # Shifted tap views, built entirely in VMEM (never touch HBM).
    y_ext = jnp.concatenate([y, yh, jnp.zeros((8, c4), jnp.float32)], axis=0)
    x01 = y_ext[1:1 + tm, :]                     # right neighbour
    x10 = y_ext[width:width + tm, :]             # down neighbour
    x11 = y_ext[width + 1:width + 1 + tm, :]     # down-right neighbour
    col = jax.lax.broadcasted_iota(jnp.int32, (tm, 1), 0) % width
    keep = jnp.where(col == width - 1, 0.0, 1.0)  # right-edge zero padding
    x01 = x01 * keep
    x11 = x11 * keep

    # Deconv taps (BN2 scale folded) as one matmul -> [ee|eo|oe|oo] phase slab.
    x4 = jnp.concatenate([y, x01, x10, x11], axis=1)             # (tm, 4*C4)
    p = jnp.dot(x4, wtap_ref[...], preferred_element_type=jnp.float32)
    y2 = jnp.maximum(p + b2_ref[...], 0.0)

    # conv3 (1x1) per phase via block-diagonal weight (BN3 scale folded).
    z = jnp.dot(y2, wblk_ref[...], preferred_element_type=jnp.float32)
    o_ref[...] = jnp.maximum(z + b3_ref[...], 0.0).astype(o_ref.dtype)


# ----------------------------------------------------------------------------
# Parameters, BN folding, module forward
# ----------------------------------------------------------------------------
def _bn_scale_shift(conv_bias, bn):
    s = bn["gamma"] * jax.lax.rsqrt(bn["var"] + EPS)
    return s, bn["beta"] + (conv_bias - bn["mean"]) * s


def init_params(key, in_channels, n_filters):
    c, c4, f = in_channels, in_channels // 4, n_filters
    ks = jax.random.split(key, 16)

    def norm_params(k, ch):
        k1, k2, k3, k4 = jax.random.split(k, 4)
        return dict(
            gamma=jax.random.uniform(k1, (ch,), jnp.float32, 0.5, 1.5),
            beta=0.1 * jax.random.normal(k2, (ch,), jnp.float32),
            mean=0.1 * jax.random.normal(k3, (ch,), jnp.float32),
            var=jax.random.uniform(k4, (ch,), jnp.float32, 0.5, 1.5),
        )

    return dict(
        conv1_w=0.1 * jax.random.normal(ks[0], (c4, c, 1, 1), jnp.float32),
        conv1_b=0.1 * jax.random.normal(ks[1], (c4,), jnp.float32),
        norm1=norm_params(ks[2], c4),
        deconv_w=0.1 * jax.random.normal(ks[3], (c4, c4, 3, 3), jnp.float32),
        deconv_b=0.1 * jax.random.normal(ks[4], (c4,), jnp.float32),
        norm2=norm_params(ks[5], c4),
        conv3_w=0.1 * jax.random.normal(ks[6], (f, c4, 1, 1), jnp.float32),
        conv3_b=0.1 * jax.random.normal(ks[7], (f,), jnp.float32),
        norm3=norm_params(ks[8], f),
    )


def decoder_block_forward(params, x_nchw, *, use_bf16=False):
    """DecoderBlock forward (eval-mode BatchNorm).  NCHW in, NCHW out."""
    compute_dtype = jnp.bfloat16 if use_bf16 else jnp.float32
    out_dtype = jnp.bfloat16 if use_bf16 else jnp.float32

    n, c, h, w = x_nchw.shape
    assert c % 4 == 0, "in_channels must be divisible by 4"
    assert w % 8 == 0, "W must be a multiple of 8 (TPU sublane tiling)"
    c4 = c // 4
    f = params["conv3_w"].shape[0]
    m = n * h * w

    # NCHW -> (pixels, channels); single input-side XLA transpose.
    # TODO(synk): a pixels-in-lanes (C, M) layout would consume NCHW directly
    # and emit lane-dense NCHW output even at very small channel counts.
    x2d = jnp.transpose(x_nchw, (0, 2, 3, 1)).reshape(m, c).astype(compute_dtype)

    # ---- fold BN scales into resident weights; keep shifts for the epilogue --
    s1, b1 = _bn_scale_shift(params["conv1_b"], params["norm1"])
    w1 = (params["conv1_w"].reshape(c4, c).T * s1[None, :]).astype(compute_dtype)

    wt = jnp.transpose(params["deconv_w"], (2, 3, 0, 1))          # (kh,kw,ci,co)
    zero = jnp.zeros((c4, c4), jnp.float32)
    # rows: [x00 | x01 | x10 | x11] blocks, cols: [ee | eo | oe | oo] phases
    wtap = jnp.concatenate([
        jnp.concatenate([wt[1, 1], wt[1, 2], wt[2, 1], wt[2, 2]], axis=1),
        jnp.concatenate([zero,     wt[1, 0], zero,     wt[2, 0]], axis=1),
        jnp.concatenate([zero,     zero,     wt[0, 1], wt[0, 2]], axis=1),
        jnp.concatenate([zero,     zero,     zero,     wt[0, 0]], axis=1),
    ], axis=0)                                                     # (4C4, 4C4)
    s2, b2 = _bn_scale_shift(params["deconv_b"], params["norm2"])
    wtap = (wtap * jnp.tile(s2, 4)[None, :]).astype(jnp.float32)   # in-VMEM: f32

    s3, b3 = _bn_scale_shift(params["conv3_b"], params["norm3"])
    w3 = params["conv3_w"].reshape(f, c4).T                        # (C4, F)
    wblk = (jnp.kron(jnp.eye(4, dtype=jnp.float32), w3)
            * jnp.tile(s3, 4)[None, :]).astype(jnp.float32)        # (4C4, 4F)

    b1t = b1.reshape(1, c4).astype(jnp.float32)
    b2t = jnp.tile(b2, 4).reshape(1, 4 * c4).astype(jnp.float32)
    b3t = jnp.tile(b3, 4).reshape(1, 4 * f).astype(jnp.float32)

    # ---- generation-aware band/tile selection ----
    cap = _vmem_capacity_bytes()
    max_tile_m = 2048 if cap >= 96 * 1024 * 1024 else 1024
    in_b = c * jnp.dtype(compute_dtype).itemsize
    out_b = 4 * f * jnp.dtype(out_dtype).itemsize
    row_bytes = 2 * in_b + 2 * out_b + (16 * c4 + 8 * f) * 4   # streams + temps
    th = _pick_band_rows(n, h, w, row_bytes, cap // 4, max_tile_m)
    tm = th * w
    nb = m // tm
    n_rows = n * h
    bands_per_image = h // th

    kernel = functools.partial(_decoder_fused_kernel, width=w,
                               bands_per_image=bands_per_image)
    flops = 2 * m * (c * c4 + (4 * c4) * (4 * c4) + (4 * c4) * (4 * f))
    bytes_accessed = (m * (in_b + out_b)
                      + int(w1.size) * jnp.dtype(compute_dtype).itemsize
                      + (int(wtap.size) + int(wblk.size)) * 4)

    out = pl.pallas_call(
        kernel,
        out_shape=jax.ShapeDtypeStruct((m, 4 * f), out_dtype),
        grid=(nb,),
        in_specs=[
            pl.BlockSpec((tm, c), lambda i: (i, 0)),               # x band
            pl.BlockSpec((w, c),                                    # 1-row halo
                         lambda i: (jnp.minimum((i + 1) * th, n_rows - 1), 0)),
            pl.BlockSpec((c, c4), lambda i: (0, 0)),               # resident
            pl.BlockSpec((1, c4), lambda i: (0, 0)),
            pl.BlockSpec((4 * c4, 4 * c4), lambda i: (0, 0)),
            pl.BlockSpec((1, 4 * c4), lambda i: (0, 0)),
            pl.BlockSpec((4 * c4, 4 * f), lambda i: (0, 0)),
            pl.BlockSpec((1, 4 * f), lambda i: (0, 0)),
        ],
        out_specs=pl.BlockSpec((tm, 4 * f), lambda i: (i, 0)),
        compiler_params=pltpu.CompilerParams(
            dimension_semantics=("parallel",),       # megacore split on v7x
            vmem_limit_bytes=max(32 * 1024 * 1024,
                                 min(cap // 2, 96 * 1024 * 1024)),
        ),
        cost_estimate=pl.CostEstimate(flops=int(flops), transcendentals=0,
                                      bytes_accessed=int(bytes_accessed)),
    )(x2d, x2d, w1, b1t, wtap, b2t, wblk, b3t)

    # Phase columns [ee|eo|oe|oo] -> NCHW in ONE XLA transpose.
    out = out.reshape(n, h, w, 2, 2, f)              # (n, iy, ix, py, px, f)
    out = jnp.transpose(out, (0, 5, 1, 3, 2, 4))     # (n, f, iy, py, ix, px)
    return out.reshape(n, f, 2 * h, 2 * w)


# ----------------------------------------------------------------------------
# Pure-JAX reference (lax convs, eval-mode BN) for verification
# ----------------------------------------------------------------------------
def reference_forward(params, x_nchw):
    dn = ("NCHW", "OIHW", "NCHW")

    def bn_relu(x, p):
        g, b, mu, v = (p[k][None, :, None, None]
                       for k in ("gamma", "beta", "mean", "var"))
        return jax.nn.relu((x - mu) / jnp.sqrt(v + EPS) * g + b)

    x = jax.lax.conv_general_dilated(x_nchw, params["conv1_w"], (1, 1), "VALID",
                                     dimension_numbers=dn)
    x = bn_relu(x + params["conv1_b"][None, :, None, None], params["norm1"])

    # conv_transpose(k=3,s=2,p=1,op=1) == dilated conv with flipped/swapped kernel
    w_eq = jnp.flip(params["deconv_w"], axis=(2, 3)).transpose(1, 0, 2, 3)
    x = jax.lax.conv_general_dilated(x, w_eq, (1, 1), ((1, 2), (1, 2)),
                                     lhs_dilation=(2, 2), dimension_numbers=dn)
    x = bn_relu(x + params["deconv_b"][None, :, None, None], params["norm2"])

    x = jax.lax.conv_general_dilated(x, params["conv3_w"], (1, 1), "VALID",
                                     dimension_numbers=dn)
    x = bn_relu(x + params["conv3_b"][None, :, None, None], params["norm3"])
    return x


if __name__ == "__main__":
    key = jax.random.PRNGKey(0)
    k_x, k_p = jax.random.split(key)

    in_channels, n_filters = 16, 8
    N, H, W = 2, 16, 16
    x = jax.random.normal(k_x, (N, in_channels, H, W), jnp.float32)     # NCHW
    params = init_params(k_p, in_channels, n_filters)

    ref = jax.block_until_ready(reference_forward(params, x))

    # f32 path: strict check against the lax reference.
    out = jax.block_until_ready(jax.jit(decoder_block_forward)(params, x))
    assert out.shape == (N, n_filters, 2 * H, 2 * W), out.shape
    np.testing.assert_allclose(np.asarray(out), np.asarray(ref),
                               atol=2e-4, rtol=2e-4)

    # bf16 streamed-operand / bf16 output path (v6e/v7x): loosened tolerance.
    fwd_bf16 = jax.jit(functools.partial(decoder_block_forward, use_bf16=True))
    out_bf16 = jax.block_until_ready(fwd_bf16(params, x))
    np.testing.assert_allclose(np.asarray(out_bf16.astype(jnp.float32)),
                               np.asarray(ref), atol=5e-2, rtol=5e-2)

    print("KERNEL_OK")
</pallas_src>

<mosaic_0001>
module attributes {stable_mosaic.version = 11 : i64} {
  func.func @_decoder_fused_kernel(%arg0: i32, %arg1: memref<64x16xf32, #tpu.memory_space<vmem>>, %arg2: memref<16x16xf32, #tpu.memory_space<vmem>>, %arg3: memref<16x4xf32, #tpu.memory_space<vmem>>, %arg4: memref<1x4xf32, #tpu.memory_space<vmem>>, %arg5: memref<16x16xf32, #tpu.memory_space<vmem>>, %arg6: memref<1x16xf32, #tpu.memory_space<vmem>>, %arg7: memref<16x32xf32, #tpu.memory_space<vmem>>, %arg8: memref<1x32xf32, #tpu.memory_space<vmem>>, %arg9: memref<64x32xf32, #tpu.memory_space<vmem>>) attributes {dimension_semantics = [#tpu.dimension_semantics<parallel>], iteration_bounds = array<i64: 8>, scalar_prefetch = 0 : i64, scratch_operands = 0 : i64, tpu.core_type = #tpu.core_type<tc>, window_params = [{transform_indices = @transform_0, window_bounds = array<i64: 64, 16>}, {transform_indices = @transform_1, window_bounds = array<i64: 16, 16>}, {pipeline_mode = #tpu.pipeline_mode<synchronous>, transform_indices = @transform_2, window_bounds = array<i64: 16, 4>}, {pipeline_mode = #tpu.pipeline_mode<synchronous>, transform_indices = @transform_3, window_bounds = array<i64: 1, 4>}, {pipeline_mode = #tpu.pipeline_mode<synchronous>, transform_indices = @transform_4, window_bounds = array<i64: 16, 16>}, {pipeline_mode = #tpu.pipeline_mode<synchronous>, transform_indices = @transform_5, window_bounds = array<i64: 1, 16>}, {pipeline_mode = #tpu.pipeline_mode<synchronous>, transform_indices = @transform_6, window_bounds = array<i64: 16, 32>}, {pipeline_mode = #tpu.pipeline_mode<synchronous>, transform_indices = @transform_7, window_bounds = array<i64: 1, 32>}, {transform_indices = @transform_8, window_bounds = array<i64: 64, 32>}]} {
    %c0 = arith.constant 0 : index
    %c0_0 = arith.constant 0 : index
    %0 = vector.load %arg1[%c0, %c0_0] : memref<64x16xf32, #tpu.memory_space<vmem>>, vector<64x16xf32>
    %c0_1 = arith.constant 0 : index
    %c0_2 = arith.constant 0 : index
    %1 = vector.load %arg3[%c0_1, %c0_2] : memref<16x4xf32, #tpu.memory_space<vmem>>, vector<16x4xf32>
    %cst = arith.constant dense<0.000000e+00> : vector<64x4xf32>
    %2 = tpu.matmul %0, %1, %cst {dimension_numbers = #tpu.dot_dimension_numbers<[1], [0], [0], [1], [0, 0, 1, 1], [], []>} : vector<64x16xf32>, vector<16x4xf32>, vector<64x4xf32> -> vector<64x4xf32>
    %c0_3 = arith.constant 0 : index
    %c0_4 = arith.constant 0 : index
    %3 = vector.load %arg4[%c0_3, %c0_4] : memref<1x4xf32, #tpu.memory_space<vmem>>, vector<1x4xf32>
    %4 = vector.broadcast %3 : vector<1x4xf32> to vector<64x4xf32>
    %5 = arith.addf %2, %4 : vector<64x4xf32>
    %cst_5 = arith.constant 0.000000e+00 : f32
    %6 = vector.broadcast %cst_5 : f32 to vector<64x4xf32>
    %7 = arith.maximumf %5, %6 : vector<64x4xf32>
    %c0_6 = arith.constant 0 : index
    %c0_7 = arith.constant 0 : index
    %8 = vector.load %arg2[%c0_6, %c0_7] : memref<16x16xf32, #tpu.memory_space<vmem>>, vector<16x16xf32>
    %c0_8 = arith.constant 0 : index
    %c0_9 = arith.constant 0 : index
    %9 = vector.load %arg3[%c0_8, %c0_9] : memref<16x4xf32, #tpu.memory_space<vmem>>, vector<16x4xf32>
    %cst_10 = arith.constant dense<0.000000e+00> : vector<16x4xf32>
    %10 = tpu.matmul %8, %9, %cst_10 {dimension_numbers = #tpu.dot_dimension_numbers<[1], [0], [0], [1], [0, 0, 1, 1], [], []>} : vector<16x16xf32>, vector<16x4xf32>, vector<16x4xf32> -> vector<16x4xf32>
    %c0_11 = arith.constant 0 : index
    %c0_12 = arith.constant 0 : index
    %11 = vector.load %arg4[%c0_11, %c0_12] : memref<1x4xf32, #tpu.memory_space<vmem>>, vector<1x4xf32>
    %12 = vector.broadcast %11 : vector<1x4xf32> to vector<16x4xf32>
    %13 = arith.addf %10, %12 : vector<16x4xf32>
    %cst_13 = arith.constant 0.000000e+00 : f32
    %14 = vector.broadcast %cst_13 : f32 to vector<16x4xf32>
    %15 = arith.maximumf %13, %14 : vector<16x4xf32>
    %c4_i32 = arith.constant 4 : i32
    %c0_i32 = arith.constant 0 : i32
    %16 = arith.cmpi eq, %c4_i32, %c0_i32 : i32
    %c1_i32 = arith.constant 1 : i32
    %17 = arith.select %16, %c1_i32, %c4_i32 : i32
    %18 = arith.remsi %arg0, %17 : i32
    %c0_i32_14 = arith.constant 0 : i32
    %19 = arith.cmpi ne, %18, %c0_i32_14 : i32
    %c0_i32_15 = arith.constant 0 : i32
    %20 = arith.cmpi slt, %18, %c0_i32_15 : i32
    %c0_i32_16 = arith.constant 0 : i32
    %21 = arith.cmpi slt, %17, %c0_i32_16 : i32
    %22 = arith.xori %20, %21 : i1
    %23 = arith.andi %22, %19 : i1
    %24 = arith.addi %18, %17 : i32
    %25 = arith.select %23, %24, %18 : i32
    %c3_i32 = arith.constant 3 : i32
    %26 = arith.cmpi eq, %25, %c3_i32 : i32
    %cst_17 = arith.constant 0.000000e+00 : f32
    %cst_18 = arith.constant 1.000000e+00 : f32
    %27 = arith.select %26, %cst_17, %cst_18 : f32
    %28 = vector.broadcast %27 : f32 to vector<16x4xf32>
    %29 = arith.mulf %15, %28 : vector<16x4xf32>
    %cst_19 = arith.constant 0.000000e+00 : f32
    %30 = vector.broadcast %cst_19 : f32 to vector<8x4xf32>
    %31 = tpu.concatenate %7, %29, %30 in 0 : vector<64x4xf32>, vector<16x4xf32>, vector<8x4xf32> -> vector<88x4xf32>
    %32 = vector.extract_strided_slice %31 {offsets = [1, 0], sizes = [64, 4], strides = [1, 1]} : vector<88x4xf32> to vector<64x4xf32>
    %33 = vector.extract_strided_slice %31 {offsets = [16, 0], sizes = [64, 4], strides = [1, 1]} : vector<88x4xf32> to vector<64x4xf32>
    %34 = vector.extract_strided_slice %31 {offsets = [17, 0], sizes = [64, 4], strides = [1, 1]} : vector<88x4xf32> to vector<64x4xf32>
    %35 = tpu.iota {dimensions = array<i32: 0>} : vector<64x1xi32>
    %c16_i32 = arith.constant 16 : i32
    %c0_i32_20 = arith.constant 0 : i32
    %36 = arith.cmpi eq, %c16_i32, %c0_i32_20 : i32
    %c1_i32_21 = arith.constant 1 : i32
    %37 = arith.select %36, %c1_i32_21, %c16_i32 : i32
    %38 = vector.broadcast %37 : i32 to vector<64x1xi32>
    %39 = arith.remsi %35, %38 : vector<64x1xi32>
    %c0_i32_22 = arith.constant 0 : i32
    %40 = vector.broadcast %c0_i32_22 : i32 to vector<64x1xi32>
    %41 = arith.cmpi ne, %39, %40 : vector<64x1xi32>
    %c0_i32_23 = arith.constant 0 : i32
    %42 = vector.broadcast %c0_i32_23 : i32 to vector<64x1xi32>
    %43 = arith.cmpi slt, %39, %42 : vector<64x1xi32>
    %c0_i32_24 = arith.constant 0 : i32
    %44 = arith.cmpi slt, %37, %c0_i32_24 : i32
    %45 = vector.broadcast %44 : i1 to vector<64x1xi1>
    %46 = vector.broadcast %45 : vector<64x1xi1> to vector<64x1xi1>
    %47 = arith.xori %43, %46 : vector<64x1xi1>
    %48 = arith.andi %47, %41 : vector<64x1xi1>
    %49 = vector.broadcast %37 : i32 to vector<64x1xi32>
    %50 = arith.addi %39, %49 : vector<64x1xi32>
    %51 = arith.select %48, %50, %39 : vector<64x1xi1>, vector<64x1xi32>
    %c15_i32 = arith.constant 15 : i32
    %52 = vector.broadcast %c15_i32 : i32 to vector<64x1xi32>
    %53 = arith.cmpi eq, %51, %52 : vector<64x1xi32>
    %cst_25 = arith.constant 0.000000e+00 : f32
    %cst_26 = arith.constant 1.000000e+00 : f32
    %54 = vector.broadcast %cst_25 : f32 to vector<64x1xf32>
    %55 = vector.broadcast %cst_26 : f32 to vector<64x1xf32>
    %56 = arith.select %53, %54, %55 : vector<64x1xi1>, vector<64x1xf32>
    %57 = vector.broadcast %56 : vector<64x1xf32> to vector<64x4xf32>
    %58 = arith.mulf %32, %57 : vector<64x4xf32>
    %59 = vector.broadcast %56 : vector<64x1xf32> to vector<64x4xf32>
    %60 = arith.mulf %34, %59 : vector<64x4xf32>
    %61 = tpu.concatenate %7, %58, %33, %60 in 1 : vector<64x4xf32>, vector<64x4xf32>, vector<64x4xf32>, vector<64x4xf32> -> vector<64x16xf32>
    %c0_27 = arith.constant 0 : index
    %c0_28 = arith.constant 0 : index
    %62 = vector.load %arg5[%c0_27, %c0_28] : memref<16x16xf32, #tpu.memory_space<vmem>>, vector<16x16xf32>
    %cst_29 = arith.constant dense<0.000000e+00> : vector<64x16xf32>
    %63 = tpu.matmul %61, %62, %cst_29 {dimension_numbers = #tpu.dot_dimension_numbers<[1], [0], [0], [1], [0, 0, 1, 1], [], []>} : vector<64x16xf32>, vector<16x16xf32>, vector<64x16xf32> -> vector<64x16xf32>
    %c0_30 = arith.constant 0 : index
    %c0_31 = arith.constant 0 : index
    %64 = vector.load %arg6[%c0_30, %c0_31] : memref<1x16xf32, #tpu.memory_space<vmem>>, vector<1x16xf32>
    %65 = vector.broadcast %64 : vector<1x16xf32> to vector<64x16xf32>
    %66 = arith.addf %63, %65 : vector<64x16xf32>
    %cst_32 = arith.constant 0.000000e+00 : f32
    %67 = vector.broadcast %cst_32 : f32 to vector<64x16xf32>
    %68 = arith.maximumf %66, %67 : vector<64x16xf32>
    %c0_33 = arith.constant 0 : index
    %c0_34 = arith.constant 0 : index
    %69 = vector.load %arg7[%c0_33, %c0_34] : memref<16x32xf32, #tpu.memory_space<vmem>>, vector<16x32xf32>
    %cst_35 = arith.constant dense<0.000000e+00> : vector<64x32xf32>
    %70 = tpu.matmul %68, %69, %cst_35 {dimension_numbers = #tpu.dot_dimension_numbers<[1], [0], [0], [1], [0, 0, 1, 1], [], []>} : vector<64x16xf32>, vector<16x32xf32>, vector<64x32xf32> -> vector<64x32xf32>
    %c0_36 = arith.constant 0 : index
    %c0_37 = arith.constant 0 : index
    %71 = vector.load %arg8[%c0_36, %c0_37] : memref<1x32xf32, #tpu.memory_space<vmem>>, vector<1x32xf32>
    %72 = vector.broadcast %71 : vector<1x32xf32> to vector<64x32xf32>
    %73 = arith.addf %70, %72 : vector<64x32xf32>
    %cst_38 = arith.constant 0.000000e+00 : f32
    %74 = vector.broadcast %cst_38 : f32 to vector<64x32xf32>
    %75 = arith.maximumf %73, %74 : vector<64x32xf32>
    %c0_39 = arith.constant 0 : index
    %c0_40 = arith.constant 0 : index
    %76 = vector.load %arg9[%c0_39, %c0_40] : memref<64x32xf32, #tpu.memory_space<vmem>>, vector<64x32xf32>
    tpu.vector_store %arg9[%c0_39, %c0_40], %75 {strides = array<i32>} : memref<64x32xf32, #tpu.memory_space<vmem>>, vector<64x32xf32>,
    return
  }
  func.func @transform_0(%arg0: i32) -> (i32, i32) {
    %c0_i32 = arith.constant 0 : i32
    %c0_i32_0 = arith.constant 0 : i32
    return %arg0, %c0_i32 : i32, i32
  }
  func.func @transform_1(%arg0: i32) -> (i32, i32) {
    %c1_i32 = arith.constant 1 : i32
    %0 = arith.addi %arg0, %c1_i32 : i32
    %c4_i32 = arith.constant 4 : i32
    %1 = arith.muli %0, %c4_i32 : i32
    %c31_i32 = arith.constant 31 : i32
    %2 = arith.minsi %1, %c31_i32 : i32
    %c0_i32 = arith.constant 0 : i32
    %c0_i32_0 = arith.constant 0 : i32
    return %2, %c0_i32 : i32, i32
  }
  func.func @transform_2(%arg0: i32) -> (i32, i32) {
    %c0_i32 = arith.constant 0 : i32
    %c0_i32_0 = arith.constant 0 : i32
    %c0_i32_1 = arith.constant 0 : i32
    return %c0_i32, %c0_i32_0 : i32, i32
  }
  func.func @transform_3(%arg0: i32) -> (i32, i32) {
    %c0_i32 = arith.constant 0 : i32
    %c0_i32_0 = arith.constant 0 : i32
    %c0_i32_1 = arith.constant 0 : i32
    return %c0_i32, %c0_i32_0 : i32, i32
  }
  func.func @transform_4(%arg0: i32) -> (i32, i32) {
    %c0_i32 = arith.constant 0 : i32
    %c0_i32_0 = arith.constant 0 : i32
    %c0_i32_1 = arith.constant 0 : i32
    return %c0_i32, %c0_i32_0 : i32, i32
  }
  func.func @transform_5(%arg0: i32) -> (i32, i32) {
    %c0_i32 = arith.constant 0 : i32
    %c0_i32_0 = arith.constant 0 : i32
    %c0_i32_1 = arith.constant 0 : i32
    return %c0_i32, %c0_i32_0 : i32, i32
  }
  func.func @transform_6(%arg0: i32) -> (i32, i32) {
    %c0_i32 = arith.constant 0 : i32
    %c0_i32_0 = arith.constant 0 : i32
    %c0_i32_1 = arith.constant 0 : i32
    return %c0_i32, %c0_i32_0 : i32, i32
  }
  func.func @transform_7(%arg0: i32) -> (i32, i32) {
    %c0_i32 = arith.constant 0 : i32
    %c0_i32_0 = arith.constant 0 : i32
    %c0_i32_1 = arith.constant 0 : i32
    return %c0_i32, %c0_i32_0 : i32, i32
  }
  func.func @transform_8(%arg0: i32) -> (i32, i32) {
    %c0_i32 = arith.constant 0 : i32
    %c0_i32_0 = arith.constant 0 : i32
    return %arg0, %c0_i32 : i32, i32
  }
}

</mosaic_0001>

<bundles_post_ra>
// kernel: tile.33
= control target key start
LH: loop header
LB: loop body
LE: loop exit
PB: predicated region body
PF: predicated region fallthrough
CT: control target
= control target key end

     0   :  { %s22_s0 = inlined_call_operand.vmem [shape: f32[4], index: 0, kind: input, shape index: {}]   ;;  %s23_s1 = inlined_call_operand.vmem [shape: f32[4,4], index: 1, kind: output, shape index: {}]  }
   0x1   :  { %v4_v0 = vld [vmem:[%s22_s0] ss:$0 sm:$0xff] }
   0x2   :  { %5 = vst [vmem:[%s23_s1] sm:$0xf] %v4_v0 }

// kernel: tile.38
= control target key start
LH: loop header
LB: loop body
LE: loop exit
PB: predicated region body
PF: predicated region fallthrough
CT: control target
= control target key end

     0   :  { %s22_s0 = inlined_call_operand.vmem [shape: f32[8], index: 0, kind: input, shape index: {}]   ;;  %s23_s1 = inlined_call_operand.vmem [shape: f32[4,8], index: 1, kind: output, shape index: {}]  }
   0x1   :  { %v4_v0 = vld [vmem:[%s22_s0] ss:$0 sm:$0xff] }
   0x2   :  { %5 = vst [vmem:[%s23_s1] sm:$0xf] %v4_v0 }

// kernel: tile.34
= control target key start
LH: loop header
LB: loop body
LE: loop exit
PB: predicated region body
PF: predicated region fallthrough
CT: control target
= control target key end

     0   :  { %vm7_vm0 = vcmask 31744   ;;  %s37_s8 = smov 4   ;;  %s38_s9 = smov 8   ;;  %vm13_vm1 = vcmask 130144   ;;  %vm19_vm2 = vcmask 97344   ;;  %vm25_vm3 = vcmask 64544   ;;  %s55_s0 = inlined_call_operand.vmem [shape: f32[4,4], index: 0, kind: input, shape index: {}]   ;;  %s56_s1 = inlined_call_operand.vmem [shape: f32[1,16], index: 1, kind: output, shape index: {}]  }
   0x1   :  { %v4_v0 = vld [vmem:[%s55_s0] sm:$0xf]  ;;  %s36_s0 = smov 12  }
   0x2   :  { %5 = vst [vmem:[#allocation1] sm:$0xf] %v4_v0 }
   0x9   :  { %v10_v1 = vld [vmem:[#allocation1 + $0x3] sm:$0x1]   ;;  %v22_v2 = vld [vmem:[#allocation1 + $0x1] sm:$0x1]   ;;  %v6_v3 = vld [vmem:[#allocation1] sm:$0x1]  }
   0xa   :  { %11 = vrot.lane.b32.xlu0 %v10_v1, %s36_s0  ;;  %23 = vrot.lane.b32.xlu1 %v22_v2, %s37_s8  ;;  %v16_v4 = vld [vmem:[#allocation1 + $0x2] sm:$0x1]   ;;  %8 = vst.msk [vmem:[#allocation0] sm:$0x1] %vm7_vm0, %v6_v3  }
   0xe   :  { %17 = vrot.lane.b32.xlu0 %v16_v4, %s38_s9 }
  0x7c   :  { %v12_v5 = vpop.permute.xlu0 %11   ;;  %v24_v6 = vpop.permute.xlu1 %23  }
  0x7d   :  { %14 = vst.msk [vmem:[#allocation0] sm:$0x1] %vm13_vm1, %v12_v5  }
  0x80   :  { %v18_v7 = vpop.permute.xlu0 %17  }
  0x81   :  { %20 = vst.msk [vmem:[#allocation0] sm:$0x1] %vm19_vm2, %v18_v7  }
  0x82   :  { %26 = vst.msk [vmem:[#allocation0] sm:$0x1] %vm25_vm3, %v24_v6  }
  0x89   :  { %v30_v8 = vld [vmem:[#allocation0] sm:$0x1] }
  0x8a   :  { %32 = vst [vmem:[%s56_s1] sm:$0x1] %v30_v8 }

// kernel: tile.39
= control target key start
LH: loop header
LB: loop body
LE: loop exit
PB: predicated region body
PF: predicated region fallthrough
CT: control target
= control target key end

     0   :  { %vm7_vm0 = vcmask 64512   ;;  %s37_s8 = smov 8   ;;  %s38_s9 = smov 16   ;;  %vm13_vm1 = vcmask 261312   ;;  %vm19_vm2 = vcmask 195712   ;;  %vm25_vm3 = vcmask 130112   ;;  %s55_s0 = inlined_call_operand.vmem [shape: f32[4,8], index: 0, kind: input, shape index: {}]   ;;  %s56_s1 = inlined_call_operand.vmem [shape: f32[1,32], index: 1, kind: output, shape index: {}]  }
   0x1   :  { %v4_v0 = vld [vmem:[%s55_s0] sm:$0xf]  ;;  %s36_s0 = smov 24  }
   0x2   :  { %5 = vst [vmem:[#allocation1] sm:$0xf] %v4_v0 }
   0x9   :  { %v10_v1 = vld [vmem:[#allocation1 + $0x3] sm:$0x1]   ;;  %v22_v2 = vld [vmem:[#allocation1 + $0x1] sm:$0x1]   ;;  %v6_v3 = vld [vmem:[#allocation1] sm:$0x1]  }
   0xa   :  { %11 = vrot.lane.b32.xlu0 %v10_v1, %s36_s0  ;;  %23 = vrot.lane.b32.xlu1 %v22_v2, %s37_s8  ;;  %v16_v4 = vld [vmem:[#allocation1 + $0x2] sm:$0x1]   ;;  %8 = vst.msk [vmem:[#allocation0] sm:$0x1] %vm7_vm0, %v6_v3  }
   0xe   :  { %17 = vrot.lane.b32.xlu0 %v16_v4, %s38_s9 }
  0x7c   :  { %v12_v5 = vpop.permute.xlu0 %11   ;;  %v24_v6 = vpop.permute.xlu1 %23  }
  0x7d   :  { %14 = vst.msk [vmem:[#allocation0] sm:$0x1] %vm13_vm1, %v12_v5  }
  0x80   :  { %v18_v7 = vpop.permute.xlu0 %17  }
  0x81   :  { %20 = vst.msk [vmem:[#allocation0] sm:$0x1] %vm19_vm2, %v18_v7  }
  0x82   :  { %26 = vst.msk [vmem:[#allocation0] sm:$0x1] %vm25_vm3, %v24_v6  }
  0x89   :  { %v30_v8 = vld [vmem:[#allocation0] sm:$0x1] }
  0x8a   :  { %32 = vst [vmem:[%s56_s1] sm:$0x1] %v30_v8 }

// kernel: mul.41
= control target key start
LH: loop header
LB: loop body
LE: loop exit
PB: predicated region body
PF: predicated region fallthrough
CT: control target
= control target key end

     0   :  { %vm7_vm0 = vcmask 31744   ;;  %s37_s8 = smov 4   ;;  %s38_s9 = smov 8   ;;  %vm13_vm1 = vcmask 130144   ;;  %vm19_vm2 = vcmask 97344   ;;  %vm25_vm3 = vcmask 64544   ;;  %s55_s0 = inlined_call_operand.vmem [shape: f32[4,4], index: 0, kind: input, shape index: {}]   ;;  %s56_s1 = inlined_call_operand.vmem [shape: f32[16], index: 1, kind: output, shape index: {}]  }
   0x1   :  { %v4_v0 = vld [vmem:[%s55_s0] sm:$0xf]  ;;  %s36_s0 = smov 12  }
   0x2   :  { %5 = vst [vmem:[#allocation1] sm:$0xf] %v4_v0 }
   0x9   :  { %v10_v1 = vld [vmem:[#allocation1 + $0x3] sm:$0x1]   ;;  %v22_v2 = vld [vmem:[#allocation1 + $0x1] sm:$0x1]   ;;  %v6_v3 = vld [vmem:[#allocation1] sm:$0x1]  }
   0xa   :  { %11 = vrot.lane.b32.xlu0 %v10_v1, %s36_s0  ;;  %23 = vrot.lane.b32.xlu1 %v22_v2, %s37_s8  ;;  %v16_v4 = vld [vmem:[#allocation1 + $0x2] sm:$0x1]   ;;  %8 = vst.msk [vmem:[#allocation0] sm:$0x1] %vm7_vm0, %v6_v3  }
   0xe   :  { %17 = vrot.lane.b32.xlu0 %v16_v4, %s38_s9 }
  0x7c   :  { %v12_v5 = vpop.permute.xlu0 %11   ;;  %v24_v6 = vpop.permute.xlu1 %23  }
  0x7d   :  { %14 = vst.msk [vmem:[#allocation0] sm:$0x1] %vm13_vm1, %v12_v5  }
  0x80   :  { %v18_v7 = vpop.permute.xlu0 %17  }
  0x81   :  { %20 = vst.msk [vmem:[#allocation0] sm:$0x1] %vm19_vm2, %v18_v7  }
  0x82   :  { %26 = vst.msk [vmem:[#allocation0] sm:$0x1] %vm25_vm3, %v24_v6  }
  0x89   :  { %v30_v8 = vld [vmem:[#allocation0] sm:$0x1] }
  0x8a   :  { %32 = vst [vmem:[%s56_s1] sm:$0x1] %v30_v8 }

// kernel: mul.47
= control target key start
LH: loop header
LB: loop body
LE: loop exit
PB: predicated region body
PF: predicated region fallthrough
CT: control target
= control target key end

     0   :  { %vm7_vm0 = vcmask 64512   ;;  %s37_s8 = smov 8   ;;  %s38_s9 = smov 16   ;;  %vm13_vm1 = vcmask 261312   ;;  %vm19_vm2 = vcmask 195712   ;;  %vm25_vm3 = vcmask 130112   ;;  %s55_s0 = inlined_call_operand.vmem [shape: f32[4,8], index: 0, kind: input, shape index: {}]   ;;  %s56_s1 = inlined_call_operand.vmem [shape: f32[32], index: 1, kind: output, shape index: {}]  }
   0x1   :  { %v4_v0 = vld [vmem:[%s55_s0] sm:$0xf]  ;;  %s36_s0 = smov 24  }
   0x2   :  { %5 = vst [vmem:[#allocation1] sm:$0xf] %v4_v0 }
   0x9   :  { %v10_v1 = vld [vmem:[#allocation1 + $0x3] sm:$0x1]   ;;  %v22_v2 = vld [vmem:[#allocation1 + $0x1] sm:$0x1]   ;;  %v6_v3 = vld [vmem:[#allocation1] sm:$0x1]  }
   0xa   :  { %11 = vrot.lane.b32.xlu0 %v10_v1, %s36_s0  ;;  %23 = vrot.lane.b32.xlu1 %v22_v2, %s37_s8  ;;  %v16_v4 = vld [vmem:[#allocation1 + $0x2] sm:$0x1]   ;;  %8 = vst.msk [vmem:[#allocation0] sm:$0x1] %vm7_vm0, %v6_v3  }
   0xe   :  { %17 = vrot.lane.b32.xlu0 %v16_v4, %s38_s9 }
  0x7c   :  { %v12_v5 = vpop.permute.xlu0 %11   ;;  %v24_v6 = vpop.permute.xlu1 %23  }
  0x7d   :  { %14 = vst.msk [vmem:[#allocation0] sm:$0x1] %vm13_vm1, %v12_v5  }
  0x80   :  { %v18_v7 = vpop.permute.xlu0 %17  }
  0x81   :  { %20 = vst.msk [vmem:[#allocation0] sm:$0x1] %vm19_vm2, %v18_v7  }
  0x82   :  { %26 = vst.msk [vmem:[#allocation0] sm:$0x1] %vm25_vm3, %v24_v6  }
  0x89   :  { %v30_v8 = vld [vmem:[#allocation0] sm:$0x1] }
  0x8a   :  { %32 = vst [vmem:[%s56_s1] sm:$0x1] %v30_v8 }

// kernel: decoder_block_forward.1
= control target key start
LH: loop header
LB: loop body
LE: loop exit
PB: predicated region body
PF: predicated region fallthrough
CT: control target
= control target key end

     0   :  { %s1547_s27 = smov 0   ;;  %s1835_s0 = inlined_call_operand.vmem [shape: f32[512,16], index: 0, kind: input, shape index: {}, may-alias: {0,1}]   ;;  %s1836_s1 = inlined_call_operand.vmem [shape: f32[512,16], index: 1, kind: input, shape index: {}, may-alias: {0,1}]   ;;  %s1837_s2 = inlined_call_operand.vmem [shape: f32[16,4], index: 2, kind: input, shape index: {}]   ;;  %s1838_s3 = inlined_call_operand.vmem [shape: f32[1,4], index: 3, kind: input, shape index: {}]   ;;  %s1839_s4 = inlined_call_operand.vmem [shape: f32[16,16], index: 4, kind: input, shape index: {}]   ;;  %s1840_s5 = inlined_call_operand.vmem [shape: f32[1,16], index: 5, kind: input, shape index: {}]   ;;  %s1841_s6 = inlined_call_operand.vmem [shape: f32[16,32], index: 6, kind: input, shape index: {}]   ;;  %s1842_s7 = inlined_call_operand.vmem [shape: f32[1,32], index: 7, kind: input, shape index: {}]   ;;  %s1843_s8 = inlined_call_operand.vmem [shape: f32[512,32], index: 8, kind: output, shape index: {}]  }
   0x1 LB: > { %s1553_s28 = sadd.s32 4294967295, %s1496_s27   ;;  %p1323_p0 = scmp.ge.s32.totalorder %s1496_s27, 1  ;;  %s1496_s27 = sphi %s1547_s27, %s18_s27  }
   0x2   : > { %p290_p1 = scmp.lt.s32.totalorder %s1496_s27, 9 }
   0x4   : > { %p291_p2 = pnand %p1323_p0, %p290_p1 }
   0x5   : > { %v367_v0 = vld [vmem:[%s1837_s2] sm:$0xff] (!%p291_p2)  ;;  %v368_v1 = vld [vmem:[%s1837_s2 + $0x8] sm:$0xff] (!%p291_p2)  ;;  %s1324_s11 = sshll.u32 (!%p291_p2), %s1553_s28, 3  ;;  %s1369_s12 = sshll.u32 (!%p291_p2), %s1553_s28, 2  ;;  %vm376_vm0 = vcmask (!%p291_p2), 130048   ;;  %v616_v13 = vlaneseq (!%p291_p2)  ;;  %v1498_v23 = vmov (!%p291_p2), 1.0  }
   0x6   : > { %294 = sbr.rel (%p291_p2) target bundleno = 833 (0x341), region = 52  ;;  %v1460_v2 = vpack.c.bf16 (!%p291_p2), %v368_v1, %v367_v0  ;;  %p334_p3 = scmp.lt.s32.totalorder (!%p291_p2), %s1324_s11, 63  ;;  %v1594_v27 = vld [vmem:[%s1838_s3] ss:$0 sm:$0xff] (!%p291_p2)  ;;  %v1596_v28 = vrot.slane (!%p291_p2), %v1498_v23, 7  ;;  %vm745_vm5 = vcmask (!%p291_p2), 1040384  }
   0x7   : > { %s1370_s13 = sadd.s32 (!%p291_p2), 4, %s1369_s12  ;;  %s600_s23 = ssub.s32 (!%p291_p2), 0, %s1553_s28  ;;  %v617_v14 = vshrl.u32 (!%p291_p2), %v616_v13, 7  ;;  %vm797_vm6 = vcmask (!%p291_p2), 1046528   ;;  %vm921_vm7 = vcmask (!%p291_p2), 31744   ;;  %vm930_vm8 = vcmask (!%p291_p2), 64512  }
   0x8   : > { %p341_p4 = scmp.lt.s32.totalorder (!%p291_p2), %s1370_s13, 31  ;;  %1461 = vmatprep.subr.bf16.mxu0 (!%p291_p2), %v1460_v2  ;;  %1476 = vmatprep.subr.bf16.mxu1 (!%p291_p2), %v1460_v2  ;;  %s1342_s24 = smin.u32 (!%p291_p2), %s1553_s28, %s600_s23  ;;  %vm939_vm9 = vcmask (!%p291_p2), 97280   ;;  %vm1240_vm10 = vcmask (!%p291_p2), 261120  }
   0x9   : > { %1463 = vmatpush3.bf16.msra.mxu0 (!%p291_p2), %v1460_v2  ;;  %1477 = vmatpush3.bf16.msra.mxu1 (!%p291_p2), %v1460_v2  ;;  %s602_s25 = sand.u32 (!%p291_p2), 3, %s1342_s24   ;;  %v618_v15 = vadd.s32 (!%p291_p2), 8, %v617_v14  ;;  %p599_p6 = scmp.lt.s32.totalorder (!%p291_p2), %s1553_s28, 0  ;;  %v620_v16 = vadd.s32 (!%p291_p2), 24, %v617_v14  ;;  %v622_v17 = vadd.s32 (!%p291_p2), 40, %v617_v14  ;;  %v624_v18 = vadd.s32 (!%p291_p2), 56, %v617_v14 }
   0xa   : > { %1465 = vmatprep.subr.bf16.mxu1 (!%p291_p2), %v1460_v2  ;;  %s603_s26 = ssub.s32 (!%p291_p2), 0, %s602_s25  ;;  %s1499_s10 = smov (!%p291_p2), 8  }
   0xb   : > { %v636_v19 = vand.u32 (!%p291_p2), 15, %v618_v15  ;;  %v650_v20 = vand.u32 (!%p291_p2), 15, %v620_v16  ;;  %v664_v21 = vand.u32 (!%p291_p2), 15, %v622_v17  ;;  %v678_v22 = vand.u32 (!%p291_p2), 15, %v624_v18  ;;  %s1500_s12 = smov (!%p291_p2), 4  }
   0xd   : > { %s1845_s11 = smov (!%p334_p3, %s1324_s11), 63  ;;  %s1847_s13 = smov (!%p341_p4, %s1370_s13), 31  ;;  %vm722_vm1 = vcmp.eq.s32.totalorder %v636_v19, 15  ;;  %vm724_vm2 = vcmp.eq.s32.totalorder %v650_v20, 15  ;;  %vm726_vm3 = vcmp.eq.s32.totalorder %v664_v21, 15  ;;  %vm728_vm4 = vcmp.eq.s32.totalorder %v678_v22, 15 }
   0xe   : > { %s1325_s14 = sshll.u32 %s1845_s11, 3  ;;  %s1327_s18 = sshll.u32 %s1847_s13, 1  ;;  %v1589_v24 = vsel %vm722_vm1, 0.0, %v1498_v23  ;;  %v732_v25 = vsel %vm724_vm2, 0.0, %v1498_v23  ;;  %v734_v26 = vsel %vm726_vm3, 0.0, %v1498_v23  ;;  %v736_v30 = vsel %vm728_vm4, 0.0, %v1498_v23 }
   0xf   : > { %s337_s17 = scalar_lea.vmem %s1835_s0, %s1325_s14  ;;  %p344_p5 = scmp.lt.s32.totalorder %s1327_s18, 63  ;;  %v747_v29 = vrot.slane %v1589_v24, 7  ;;  %v751_v31 = vrot.slane %v732_v25, 7  ;;  %v755_v32 = vrot.slane %v734_v26, 7  ;;  %v1603_v39 = vrot.slane %v736_v30, 7  ;;  %v949_v24 = vld [vmem:[%s1839_s4 + $0x8] sm:$0xff] }
  0x10   : > { %v359_v3 = vld [vmem:[%s337_s17] sm:$0xff]  ;;  %v365_v4 = vld [vmem:[%s337_s17 + $0x30] sm:$0xff]  ;;  %v360_v5 = vld [vmem:[%s337_s17 + $0x8] sm:$0xff]  ;;  %s1851_s26 = smov (!%p599_p6, %s603_s26), %s602_s25  ;;  %s1501_s13 = smov 12  }
  0x11   : > { %1409 = vmatprep.mubr.msk.f32.mxu0 %vm376_vm0, %v359_v3  ;;  %1418 = vmatprep.mubr.msk.f32.mxu1 %vm376_vm0, %v365_v4  ;;  %v366_v6 = vld [vmem:[%s337_s17 + $0x38] sm:$0xff]  ;;  %v361_v7 = vld [vmem:[%s337_s17 + $0x10] sm:$0xff]  ;;  %s1849_s18 = smov (!%p344_p5, %s1327_s18), 63  ;;  %v363_v9 = vld [vmem:[%s337_s17 + $0x20] sm:$0xff]  ;;  %p1344_p7 = scmp.lt.s32.totalorder %s1851_s26, 0  ;;  %v1609_v40 = vsel %vm745_vm5, %v1596_v28, %v747_v29  ;;  %v1620_v45 = vsel %vm745_vm5, %v751_v31, %v1596_v28  ;;  %v756_v46 = vsel %vm745_vm5, %v1596_v28, %v755_v32 }
  0x12   : > { %1410 = vmatmul.mubr.msk.f32.vlgmr.msra.gmra.mrb[0].mxu0 %vm376_vm0, %v360_v5  ;;  %1419 = vmatmul.mubr.msk.f32.vlgmr.msra.gmra.mrb[0].mxu1 %vm376_vm0, %v366_v6  ;;  %v362_v8 = vld [vmem:[%s337_s17 + $0x18] sm:$0xff]  ;;  %s1328_s19 = sshll.u32 %s1849_s18, 3  ;;  %v364_v12 = vld [vmem:[%s337_s17 + $0x28] sm:$0xff]  ;;  %s609_s29 = sadd.s32 4, %s1851_s26  ;;  %v760_v53 = vsel %vm745_vm5, %v1596_v28, %v1603_v39  ;;  %v758_v57 = vsel %vm745_vm5, %v755_v32, %v1596_v28  ;;  %v752_v3 = vsel %vm745_vm5, %v1596_v28, %v751_v31 }
  0x13   : > { %1412 = vmatprep.mubr.msk.f32.mxu0 %vm376_vm0, %v361_v7  ;;  %1467 = vmatpush3.bf16.msra.mxu1 %v1460_v2  ;;  %s347_s22 = scalar_lea.vmem %s1836_s1, %s1328_s19  ;;  %s1853_s29 = smov (!%p1344_p7, %s609_s29), %s1851_s26  ;;  %v750_v25 = vsel %vm745_vm5, %v747_v29, %v1596_v28 }
  0x14   : > { %v514_v10 = vld [vmem:[%s347_s22] sm:$0xff]  ;;  %v515_v11 = vld [vmem:[%s347_s22 + $0x8] sm:$0xff]  ;;  %p611_p8 = scmp.eq.s32.totalorder %s1853_s29, 3  ;;  %s357_s30 = scalar_lea.vmem %s1843_s8, %s1325_s14 }
  0x15   : > { %1425 = vmatprep.mubr.msk.f32.mxu1 %vm376_vm0, %v514_v10 }
  0x16   : > { %1413 = vmatmul.mubr.msk.f32.gmra.mrb[2].mxu0 %vm376_vm0, %v362_v8  ;;  %1426 = vmatmul.mubr.msk.f32.vlgmr.msra.gmra.mrb[2].mxu1 %vm376_vm0, %v515_v11  ;;  %s1628_s9 = scalar_select %p611_p8, 0.0, 1.0 }
  0x17   : > { %1415 = vmatprep.mubr.msk.f32.mxu0 %vm376_vm0, %v363_v9 }
  0x18   : > { %v613_v0 = vstv %s1628_s9 }
  0x1a   : > { %1416 = vmatmul.mubr.msk.f32.gmra.mrb[4].mxu0 %vm376_vm0, %v364_v12 }
  0xe5   : > { %v1411_v33 = vpop.f32.mrb[0].mxu0  ;;  %v1420_v34 = vpop.f32.mrb[0].mxu1 }
  0xe6   : > { %v1600_v35 = vadd.f32 %v1411_v33, %v1594_v27  ;;  %v503_v36 = vadd.f32 %v1420_v34, %v1594_v27  ;;  %v467_v37 = vpop.f32.mrb[1].mxu0  ;;  %v497_v38 = vpop.f32.mrb[1].mxu1  ;;  %v948_v33 = vld [vmem:[%s1839_s4] sm:$0xff] }
  0xe7   : > { %v1612_v41 = vadd.f32 %v1594_v27, %v467_v37  ;;  %v498_v42 = vadd.f32 %v1594_v27, %v497_v38 }
  0xe8   : > { %v507_v43 = vmax.f32 %v1600_v35, 0.0  ;;  %v1616_v44 = vmax.f32 %v503_v36, 0.0 }
  0xe9   : > { %v506_v47 = vmax.f32 %v1612_v41, 0.0  ;;  %v1625_v48 = vmax.f32 %v498_v42, 0.0  ;;  %v1414_v49 = vpop.f32.mrb[2].mxu0  ;;  %v1427_v61 = vpop.f32.mrb[2].mxu1 }
  0xea   : > { %v1633_v50 = vmul.f32 %v1609_v40, %v507_v43  ;;  %v483_v51 = vadd.f32 %v1414_v49, %v1594_v27  ;;  %857 = vrot.lane.b32.xlu1 %v1616_v44, %s1499_s10  ;;  %v477_v52 = vpop.f32.mrb[3].mxu0  ;;  %v1649_v56 = vmul.f32 %v756_v46, %v1616_v44  ;;  %v594_v63 = vadd.f32 %v1427_v61, %v1594_v27  ;;  %v588_v1 = vpop.f32.mrb[3].mxu1 }
  0xeb   : > { %v770_v54 = vmul.f32 %v1596_v28, %v506_v47  ;;  %855 = vrot.lane.b32.xlu0 %v1625_v48, %s1499_s10  ;;  %v783_v55 = vmul.f32 %v1620_v45, %v1625_v48  ;;  %v478_v60 = vadd.f32 %v1594_v27, %v477_v52  ;;  %v589_v4 = vadd.f32 %v1594_v27, %v588_v1 }
  0xec   : > { %v799_v58 = vrot.slane %v1633_v50, 1  ;;  %v1654_v59 = vmax.f32 %v483_v51, 0.0  ;;  %v776_v7 = vmul.f32 %v758_v57, %v1625_v48  ;;  %v1667_v8 = vmul.f32 %v760_v53, %v1616_v44 }
  0xed   : > { %v798_v62 = vrot.slane %v770_v54, 1  ;;  %v1417_v2 = vpop.f32.mrb[4].mxu0  ;;  %v598_v9 = vmax.f32 %v594_v63, 0.0  ;;  %v887_v11 = vrot.slane %v783_v55, 1  ;;  %v889_v12 = vrot.slane %v1649_v56, 1 }
  0xee   : > { %v493_v5 = vadd.f32 %v1417_v2, %v1594_v27  ;;  %849 = vrot.lane.b32.xlu1 %v1654_v59, %s1499_s10  ;;  %v487_v6 = vpop.f32.mrb[5].mxu0  ;;  %v1673_v13 = vmax.f32 %v478_v60, 0.0  ;;  %v597_v14 = vmax.f32 %v589_v4, 0.0  ;;  %v809_v22 = vrot.slane %v776_v7, 1 }
  0xef   : > { %v800_v10 = vsel %vm797_vm6, %v798_v62, %v799_v58  ;;  %v615_v16 = vmul.f32 %v613_v0, %v598_v9  ;;  %v488_v17 = vadd.f32 %v1594_v27, %v487_v6  ;;  %v890_v21 = vsel %vm797_vm6, %v887_v11, %v889_v12 }
  0xf0   : > { %v1675_v15 = vmax.f32 %v493_v5, 0.0  ;;  %815 = vrot.lane.b32.xlu0 %v800_v10, %s1500_s12  ;;  %v1679_v18 = vmul.f32 %v613_v0, %v597_v14  ;;  %v811_v23 = vrot.slane %v1667_v8, 1  ;;  %v772_v34 = vmul.f32 %v750_v25, %v1673_v13 }
  0xf1   : > { %v1684_v20 = vmul.f32 %v760_v53, %v615_v16  ;;  %v1695_v26 = vmax.f32 %v488_v17, 0.0  ;;  %v780_v52 = vmul.f32 %v1609_v40, %v1654_v59  ;;  %v779_v53 = vmul.f32 %v1596_v28, %v1673_v13 }
  0xf2   : > { %847 = vrot.lane.b32.xlu1 %v1673_v13, %s1499_s10  ;;  %v782_v19 = vmul.f32 %v752_v3, %v1675_v15  ;;  %v775_v30 = vmul.f32 %v756_v46, %v1675_v15  ;;  %v785_v32 = vmul.f32 %v758_v57, %v1679_v18  ;;  %v812_v29 = vsel %vm797_vm6, %v809_v22, %v811_v23 }
  0xf3   : > { %v893_v31 = vrot.slane %v1684_v20, 1  ;;  %v781_v42 = vmul.f32 %v750_v25, %v1695_v26  ;;  %v1468_v46 = vpack.c.bf16 %v949_v24, %v948_v33  ;;  %v801_v51 = vrot.slane %v772_v34, 1 }
  0xf4   : > { %905 = vrot.lane.b32.xlu0 %v890_v21, %s1501_s13  ;;  %v885_v27 = vrot.slane %v782_v19, 1  ;;  %v891_v36 = vrot.slane %v785_v32, 1  ;;  %v807_v38 = vrot.slane %v775_v30, 1  ;;  %v774_v57 = vmul.f32 %v1620_v45, %v1695_v26 }
  0xf5   : > { %1469 = vmatprep.subr.bf16.mxu1 %v1468_v46  ;;  %v883_v55 = vrot.slane %v781_v42, 1  ;;  %v802_v40 = vsel %vm797_vm6, %v799_v58, %v801_v51  ;;  %v881_v60 = vrot.slane %v780_v52, 1  ;;  %v880_v61 = vrot.slane %v779_v53, 1 }
  0xf6   : > { %853 = vrot.lane.b32.xlu1 %v1675_v15, %s1499_s10  ;;  %v888_v37 = vsel %vm797_vm6, %v885_v27, %v887_v11  ;;  %v894_v49 = vsel %vm797_vm6, %v891_v36, %v893_v31  ;;  %1471 = vmatpush3.bf16.msra.mxu1 %v1468_v46  ;;  %v810_v54 = vsel %vm797_vm6, %v807_v38, %v809_v22  ;;  %v805_v63 = vrot.slane %v774_v57, 1 }
  0xf7   : > { %v773_v28 = vmul.f32 %v752_v3, %v1654_v59  ;;  %v884_v62 = vsel %vm797_vm6, %v881_v60, %v883_v55  ;;  %v882_v0 = vsel %vm797_vm6, %v880_v61, %v881_v60  ;;  %v778_v1 = vmul.f32 %v1603_v39, %v1679_v18 }
  0xf8   : > { %827 = vrot.lane.b32.xlu0 %v812_v29, %s1500_s12  ;;  %v886_v2 = vsel %vm797_vm6, %v883_v55, %v885_v27  ;;  %v892_v3 = vsel %vm797_vm6, %v889_v12, %v891_v36  ;;  %v787_v5 = vmul.f32 0.0, %v1603_v39  ;;  %v808_v6 = vsel %vm797_vm6, %v805_v63, %v807_v38 }
  0xf9   : > { %v803_v45 = vrot.slane %v773_v28, 1  ;;  %v813_v4 = vrot.slane %v778_v1, 1 }
  0xfa   : > { %903 = vrot.lane.b32.xlu1 %v888_v37, %s1501_s13  ;;  %v895_v8 = vrot.slane %v787_v5, 1 }
  0xfb   : > { %v806_v50 = vsel %vm797_vm6, %v803_v45, %v805_v63  ;;  %v804_v58 = vsel %vm797_vm6, %v801_v51, %v803_v45  ;;  %v814_v7 = vsel %vm797_vm6, %v811_v23, %v813_v4 }
  0xfc   : > { %851 = vrot.lane.b32.xlu0 %v1695_v26, %s1499_s10  ;;  %v896_v56 = vsel %vm797_vm6, %v893_v31, %v895_v8 }
  0xfe   : > { %825 = vrot.lane.b32.xlu1 %v810_v54, %s1500_s12 }
 0x100   : > { %817 = vrot.lane.b32.xlu0 %v802_v40, %s1500_s12 }
 0x102   : > { %899 = vrot.lane.b32.xlu1 %v884_v62, %s1501_s13 }
 0x104   : > { %897 = vrot.lane.b32.xlu0 %v882_v0, %s1501_s13  ;;  %v1345_v0 = vld [vmem:[%s1840_s5] ss:$0 sm:$0xff] }
 0x106   : > { %821 = vrot.lane.b32.xlu1 %v806_v50, %s1500_s12 }
 0x108   : > { %819 = vrot.lane.b32.xlu0 %v804_v58, %s1500_s12 }
 0x10a   : > { %861 = vrot.lane.b32.xlu1 %v615_v16, %s1499_s10 }
 0x10c   : > { %901 = vrot.lane.b32.xlu0 %v886_v2, %s1501_s13 }
 0x10e   : > { %907 = vrot.lane.b32.xlu1 %v892_v3, %s1501_s13 }
 0x110   : > { %823 = vrot.lane.b32.xlu0 %v808_v6, %s1500_s12 }
 0x112   : > { %829 = vrot.lane.b32.xlu1 %v814_v7, %s1500_s12 }
 0x114   : > { %859 = vrot.lane.b32.xlu0 %v1679_v18, %s1499_s10 }
 0x116   : > { %911 = vrot.lane.b32.xlu1 %v896_v56, %s1501_s13 }
 0x118   : > { %909 = vrot.lane.b32.xlu0 %v894_v49, %s1501_s13 }
 0x15c   : > { %v858_v39 = vpop.permute.xlu1 %857 }
 0x15d   : > { %v856_v9 = vpop.permute.xlu0 %855 }
 0x160   : > { %v850_v10 = vpop.permute.xlu1 %849 }
 0x162   : > { %v816_v11 = vpop.permute.xlu0 %815 }
 0x163   : > { %v922_v18 = vsel %vm921_vm7, %v506_v47, %v816_v11 }
 0x164   : > { %v848_v12 = vpop.permute.xlu1 %847 }
 0x165   : > { %v931_v30 = vsel %vm930_vm8, %v922_v18, %v848_v12  ;;  %v1354_v18 = vld [vmem:[%s1842_s7] ss:$0 sm:$0xff] }
 0x166   : > { %v906_v14 = vpop.permute.xlu0 %905 }
 0x168   : > { %v854_v16 = vpop.permute.xlu1 %853 }
 0x16a   : > { %v828_v17 = vpop.permute.xlu0 %827 }
 0x16c   : > { %v904_v19 = vpop.permute.xlu1 %903 }
 0x16e   : > { %v852_v20 = vpop.permute.xlu0 %851 }
 0x170   : > { %v826_v21 = vpop.permute.xlu1 %825 }
 0x172   : > { %v818_v22 = vpop.permute.xlu0 %817 }
 0x173   : > { %v923_v23 = vsel %vm921_vm7, %v507_v43, %v818_v22 }
 0x174   : > { %v900_v25 = vpop.permute.xlu1 %899  ;;  %v932_v27 = vsel %vm930_vm8, %v923_v23, %v850_v10 }
 0x175   : > { %v941_v33 = vsel %vm939_vm9, %v932_v27, %v900_v25 }
 0x176   : > { %v898_v31 = vpop.permute.xlu0 %897 }
 0x177   : > { %v940_v32 = vsel %vm939_vm9, %v931_v30, %v898_v31 }
 0x178   : > { %v822_v24 = vpop.permute.xlu1 %821  ;;  %1432 = vmatprep.mubr.msk.f32.mxu1 %vm376_vm0, %v940_v32 }
 0x179   : > { %1433 = vmatmul.mubr.msk.f32.vlgmr.msra.gmra.mrb[4].mxu1 %vm376_vm0, %v941_v33  ;;  %v925_v35 = vsel %vm921_vm7, %v1654_v59, %v822_v24  ;;  %v927_v59 = vsel %vm921_vm7, %v1675_v15, %v826_v21 }
 0x17a   : > { %v820_v41 = vpop.permute.xlu0 %819  ;;  %v934_v29 = vsel %vm930_vm8, %v925_v35, %v854_v16  ;;  %v936_v52 = vsel %vm930_vm8, %v927_v59, %v858_v39 }
 0x17b   : > { %v924_v43 = vsel %vm921_vm7, %v1673_v13, %v820_v41  ;;  %v943_v42 = vsel %vm939_vm9, %v934_v29, %v904_v19 }
 0x17c   : > { %v862_v47 = vpop.permute.xlu1 %861  ;;  %v933_v34 = vsel %vm930_vm8, %v924_v43, %v852_v20 }
 0x17e   : > { %v902_v36 = vpop.permute.xlu0 %901 }
 0x17f   : > { %v942_v37 = vsel %vm939_vm9, %v933_v34, %v902_v36 }
 0x180   : > { %v908_v38 = vpop.permute.xlu1 %907  ;;  %1435 = vmatprep.mubr.msk.f32.mxu1 %vm376_vm0, %v942_v37 }
 0x181   : > { %1436 = vmatmul.mubr.msk.f32.gmra.mrb[6].mxu1 %vm376_vm0, %v943_v42  ;;  %v945_v54 = vsel %vm939_vm9, %v936_v52, %v908_v38 }
 0x182   : > { %v824_v46 = vpop.permute.xlu0 %823 }
 0x183   : > { %v926_v13 = vsel %vm921_vm7, %v1695_v26, %v824_v46  ;;  %v928_v26 = vsel %vm921_vm7, %v1625_v48, %v828_v17  ;;  %v1095_v48 = vld [vmem:[%s1841_s6 + $0x8] sm:$0xff] }
 0x184   : > { %v935_v49 = vsel %vm930_vm8, %v926_v13, %v856_v9  ;;  %v830_v51 = vpop.permute.xlu1 %829 }
 0x185   : > { %v944_v53 = vsel %vm939_vm9, %v935_v49, %v906_v14  ;;  %v929_v15 = vsel %vm921_vm7, %v1616_v44, %v830_v51  ;;  %v1094_v44 = vld [vmem:[%s1841_s6] sm:$0xff] }
 0x186   : > { %1438 = vmatprep.mubr.msk.f32.mxu1 %vm376_vm0, %v944_v53  ;;  %v860_v55 = vpop.permute.xlu0 %859  ;;  %v938_v61 = vsel %vm930_vm8, %v929_v15, %v862_v47  ;;  %v1472_v63 = vpack.c.bf16 %v1095_v48, %v1094_v44 }
 0x187   : > { %1439 = vmatmul.mubr.msk.f32.gmra.mrb[8].mxu1 %vm376_vm0, %v945_v54  ;;  %v937_v40 = vsel %vm930_vm8, %v928_v26, %v860_v55 }
 0x188   : > { %v912_v57 = vpop.permute.xlu1 %911  ;;  %1473 = vmatprep.subr.bf16.mxu0 %v1472_v63 }
 0x189   : > { %v947_v62 = vsel %vm939_vm9, %v938_v61, %v912_v57  ;;  %1475 = vmatpush3.bf16.msra.mxu0 %v1472_v63 }
 0x18a   : > { %v910_v60 = vpop.permute.xlu0 %909 }
 0x18b   : > { %v946_v28 = vsel %vm939_vm9, %v937_v40, %v910_v60 }
 0x18c   : > { %1441 = vmatprep.mubr.msk.f32.mxu1 %vm376_vm0, %v946_v28 }
 0x18d   : > { %1442 = vmatmul.mubr.msk.f32.gmra.mrb[10].mxu1 %vm376_vm0, %v947_v62 }
 0x24c   : > { %v1434_v45 = vpop.f32.mrb[4].mxu1 }
 0x24d   : > { %v1053_v50 = vadd.f32 %v1434_v45, %v1345_v0  ;;  %v1047_v58 = vpop.f32.mrb[5].mxu1 }
 0x24e   : > { %v1048_v1 = vadd.f32 %v1345_v0, %v1047_v58 }
 0x24f   : > { %v1087_v3 = vmax.f32 %v1053_v50, 0.0 }
 0x250   : > { %v1086_v2 = vmax.f32 %v1048_v1, 0.0 }
 0x252   : > { %1448 = vmatprep.mubr.msk.f32.mxu0 %vm376_vm0, %v1086_v2 }
 0x253   : > { %1449 = vmatmul.mubr.msk.f32.vlgmr.msra.gmra.mrb[6].mxu0 %vm376_vm0, %v1087_v3 }
 0x254   : > { %v1437_v4 = vpop.f32.mrb[6].mxu1 }
 0x255   : > { %v1063_v5 = vadd.f32 %v1437_v4, %v1345_v0  ;;  %v1057_v6 = vpop.f32.mrb[7].mxu1 }
 0x256   : > { %v1058_v7 = vadd.f32 %v1345_v0, %v1057_v6 }
 0x257   : > { %v1089_v56 = vmax.f32 %v1063_v5, 0.0 }
 0x258   : > { %v1088_v8 = vmax.f32 %v1058_v7, 0.0 }
 0x25a   : > { %v1440_v39 = vpop.f32.mrb[8].mxu1  ;;  %1451 = vmatprep.mubr.msk.f32.mxu0 %vm376_vm0, %v1088_v8 }
 0x25b   : > { %v1073_v9 = vadd.f32 %v1440_v39, %v1345_v0  ;;  %v1067_v10 = vpop.f32.mrb[9].mxu1  ;;  %1452 = vmatmul.mubr.msk.f32.gmra.mrb[8].mxu0 %vm376_vm0, %v1089_v56 }
 0x25c   : > { %v1068_v11 = vadd.f32 %v1345_v0, %v1067_v10 }
 0x25d   : > { %v1091_v14 = vmax.f32 %v1073_v9, 0.0 }
 0x25e   : > { %v1090_v12 = vmax.f32 %v1068_v11, 0.0 }
 0x260   : > { %v1443_v16 = vpop.f32.mrb[10].mxu1  ;;  %1454 = vmatprep.mubr.msk.f32.mxu0 %vm376_vm0, %v1090_v12 }
 0x261   : > { %v1083_v17 = vadd.f32 %v1443_v16, %v1345_v0  ;;  %v1077_v19 = vpop.f32.mrb[11].mxu1  ;;  %1455 = vmatmul.mubr.msk.f32.gmra.mrb[10].mxu0 %vm376_vm0, %v1091_v14 }
 0x262   : > { %v1078_v20 = vadd.f32 %v1345_v0, %v1077_v19 }
 0x263   : > { %v1093_v22 = vmax.f32 %v1083_v17, 0.0 }
 0x264   : > { %v1092_v21 = vmax.f32 %v1078_v20, 0.0 }
 0x266   : > { %1457 = vmatprep.mubr.msk.f32.mxu0 %vm376_vm0, %v1092_v21 }
 0x267   : > { %1458 = vmatmul.mubr.msk.f32.gmra.mrb[12].mxu0 %vm376_vm0, %v1093_v22 }
 0x326   : > { %v1450_v23 = vpop.f32.mrb[6].mxu0 }
 0x327   : > { %v1199_v25 = vadd.f32 %v1450_v23, %v1354_v18  ;;  %v1193_v27 = vpop.f32.mrb[7].mxu0 }
 0x328   : > { %v1194_v30 = vadd.f32 %v1354_v18, %v1193_v27 }
 0x329   : > { %v1233_v31 = vmax.f32 %v1199_v25, 0.0 }
 0x32a   : > { %v1232_v32 = vmax.f32 %v1194_v30, 0.0 }
 0x32b   : > { %1242 = vst.msk [vmem:[%s357_s30 + $0x8] sm:$0xff] %vm1240_vm10, %v1233_v31 }
 0x32c   : > { %1241 = vst.msk [vmem:[%s357_s30] sm:$0xff] %vm1240_vm10, %v1232_v32 }
 0x32e   : > { %v1453_v33 = vpop.f32.mrb[8].mxu0 }
 0x32f   : > { %v1209_v24 = vadd.f32 %v1453_v33, %v1354_v18  ;;  %v1203_v35 = vpop.f32.mrb[9].mxu0 }
 0x330   : > { %v1204_v41 = vadd.f32 %v1354_v18, %v1203_v35 }
 0x331   : > { %v1235_v43 = vmax.f32 %v1209_v24, 0.0 }
 0x332   : > { %v1234_v47 = vmax.f32 %v1204_v41, 0.0 }
 0x333   : > { %1244 = vst.msk [vmem:[%s357_s30 + $0x18] sm:$0xff] %vm1240_vm10, %v1235_v43 }
 0x334   : > { %1243 = vst.msk [vmem:[%s357_s30 + $0x10] sm:$0xff] %vm1240_vm10, %v1234_v47  ;;  %v1456_v29 = vpop.f32.mrb[10].mxu0 }
 0x335   : > { %v1219_v34 = vadd.f32 %v1456_v29, %v1354_v18  ;;  %v1213_v36 = vpop.f32.mrb[11].mxu0 }
 0x336   : > { %v1214_v37 = vadd.f32 %v1354_v18, %v1213_v36 }
 0x337   : > { %v1237_v38 = vmax.f32 %v1219_v34, 0.0 }
 0x338   : > { %v1236_v42 = vmax.f32 %v1214_v37, 0.0 }
 0x339   : > { %1246 = vst.msk [vmem:[%s357_s30 + $0x28] sm:$0xff] %vm1240_vm10, %v1237_v38 }
 0x33a   : > { %1245 = vst.msk [vmem:[%s357_s30 + $0x20] sm:$0xff] %vm1240_vm10, %v1236_v42  ;;  %v1459_v59 = vpop.f32.mrb[12].mxu0 }
 0x33b   : > { %v1229_v46 = vadd.f32 %v1459_v59, %v1354_v18  ;;  %v1223_v13 = vpop.f32.mrb[13].mxu0 }
 0x33c   : > { %v1224_v49 = vadd.f32 %v1354_v18, %v1223_v13 }
 0x33d   : > { %v1239_v51 = vmax.f32 %v1229_v46, 0.0 }
 0x33e   : > { %v1238_v52 = vmax.f32 %v1224_v49, 0.0 }
 0x33f   : > { %1248 = vst.msk [vmem:[%s357_s30 + $0x38] sm:$0xff] %vm1240_vm10, %v1239_v51 }
 0x340   : > { %1247 = vst.msk [vmem:[%s357_s30 + $0x30] sm:$0xff] %vm1240_vm10, %v1238_v52 }
 0x341 PF: > { %s18_s27 = sadd.s32 1, %s1496_s27  }
 0x342   : > { %p15_p9 = scmp.ge.s32.totalorder %s18_s27, 10  }
 0x344   :  { %17 = sbr.rel (!%p15_p9) target bundleno = 1 (0x1), region = 85 }

</bundles_post_ra>
